<compile_context>
chip_gen: v6e
topology: v6e:2x2x1
jax: 0.10.0
libtpu: 0.0.40
codegen_flags: <defaults>
</compile_context>

<pallas_src>
import functools
import math
from typing import NamedTuple, Tuple

import jax
import jax.numpy as jnp
from jax.experimental import pallas as pl
from jax.experimental.pallas import tpu as pltpu

LANE = 128


def _round_up(n, m):
    return ((n + m - 1) // m) * m


def init_mlp_params(key, shapes):
    """Deterministic parameter init. Weights stored as (in_dim, out_dim),
    matching y = x @ W + b (equivalent to torch Linear's x @ W.T + b)."""
    params = []
    for i in range(len(shapes) - 1):
        key, kw, kb = jax.random.split(key, 3)
        fan_in = shapes[i]
        bound = 1.0 / math.sqrt(fan_in)
        W = jax.random.uniform(kw, (shapes[i], shapes[i + 1]),
                               minval=-bound, maxval=bound, dtype=jnp.float32)
        b = jax.random.uniform(kb, (shapes[i + 1],),
                               minval=-bound, maxval=bound, dtype=jnp.float32)
        params.append((W, b))
    return params


class PackedParams(NamedTuple):
    flat: Tuple[jax.Array, ...]   # (W0, b0, W1, b1, ...)
    in_dim: int                   # true (unpadded) input width
    out_dim: int                  # true (unpadded) output width


def pack_params(params, weight_dtype=jnp.bfloat16):
    """Fold 1/255 into W0, pad every *output* dim to a multiple of 128 lanes,
    cast weights to `weight_dtype` (biases stay f32). Call this ONCE and reuse
    the result across forward calls.

    Zero padding is exact: padded output columns get bias 0 (ReLU(0)=0) and the
    corresponding padded input rows of the next weight are 0."""
    in_dim = params[0][0].shape[0]
    out_dims = [W.shape[1] for W, _ in params]
    p_out = [_round_up(d, LANE) for d in out_dims]

    flat = []
    prev_rows = in_dim
    for i, (W, b) in enumerate(params):
        W = jnp.asarray(W, jnp.float32)
        b = jnp.asarray(b, jnp.float32)
        if i == 0:
            W = W * (1.0 / 255.0)           # fold the /255 scale into layer 0
        Wp = jnp.zeros((prev_rows, p_out[i]), jnp.float32)
        Wp = Wp.at[:W.shape[0], :W.shape[1]].set(W)
        bp = jnp.zeros((1, p_out[i]), jnp.float32)
        bp = bp.at[0, :b.shape[0]].set(b)
        flat.append(Wp.astype(weight_dtype))
        flat.append(bp)                     # bias stays f32 (elementwise path)
        prev_rows = p_out[i]
    return PackedParams(flat=tuple(flat), in_dim=in_dim, out_dim=out_dims[-1])


def _mlp_kernel(n_layers, *refs):
    x_ref = refs[0]
    out_ref = refs[-1]
    h = x_ref[...]                          # (tb, in_dim), streamed in weight dtype
    for li in range(n_layers):
        w = refs[1 + 2 * li][...]
        b = refs[2 + 2 * li][...]
        # bf16 MXU path with f32 accumulation; true-f32 weights get HIGHEST
        # precision so the "f32" path is not silently bf16.
        prec = jax.lax.Precision.HIGHEST if w.dtype == jnp.float32 else None
        h = jnp.dot(h.astype(w.dtype), w,
                    preferred_element_type=jnp.float32, precision=prec)
        h = h + b                           # f32 bias add
        if li < n_layers - 1:
            # Dropout is identity at inference; ReLU on the small hidden tile.
            h = jnp.maximum(h, 0.0)
    out_ref[...] = h.astype(out_ref.dtype)


@functools.partial(jax.jit, static_argnames=("out_dim", "out_dtype", "tb_max"))
def _forward_packed(x, flat_args, *, out_dim, out_dtype, tb_max):
    B = x.shape[0]
    n_layers = len(flat_args) // 2
    act_dtype = flat_args[0].dtype          # stream x in the matmul dtype (bf16 default)
    in_dim = flat_args[0].shape[0]
    out_p = flat_args[-2].shape[1]          # padded head width (multiple of 128)

    x_flat = x.reshape(B, -1).astype(act_dtype)   # 0..255 pixel values exact in bf16

    # Batch tile: large for HBM roofline, but keep >=2 grid tiles when the
    # batch allows it so both v7x TensorCores get work ("parallel" axis).
    if B >= 16:
        tb = min(tb_max, _round_up(pl.cdiv(B, 2), 8))
    else:
        tb = _round_up(max(B, 1), 8)
    grid = (pl.cdiv(B, tb),)                # ragged tail handled by masked edge block

    in_specs = [pl.BlockSpec((tb, in_dim), lambda i: (i, 0))]
    for li in range(n_layers):
        w_shape = flat_args[2 * li].shape
        b_shape = flat_args[2 * li + 1].shape
        # Same block every grid step -> weights/biases stay resident in VMEM.
        in_specs.append(pl.BlockSpec(w_shape, lambda i: (0, 0)))
        in_specs.append(pl.BlockSpec(b_shape, lambda i: (0, 0)))
    out_specs = pl.BlockSpec((tb, out_p), lambda i: (i, 0))

    out_padded = pl.pallas_call(
        functools.partial(_mlp_kernel, n_layers),
        out_shape=jax.ShapeDtypeStruct((B, out_p), out_dtype),
        grid=grid,
        in_specs=in_specs,
        out_specs=out_specs,
        compiler_params=pltpu.CompilerParams(
            dimension_semantics=("parallel",),     # shard batch tiles across TCs (v7x)
            vmem_limit_bytes=32 * 1024 * 1024,     # portable to v7x's 64 MiB VMEM
        ),
    )(x_flat, *flat_args)

    # Slice back to the true (unpadded) head width.
    return out_padded[:, :out_dim]


def mlp_forward_pallas(x, packed: PackedParams, *, out_dtype=jnp.bfloat16,
                       tb_max=1024):
    """x: (B, C, H, W) pixel values in [0, 255]. Returns (B, out_dim) logits."""
    feat = int(math.prod(x.shape[1:]))
    assert feat == packed.in_dim, f"flattened width {feat} != packed in_dim {packed.in_dim}"
    return _forward_packed(x, packed.flat, out_dim=packed.out_dim,
                           out_dtype=out_dtype, tb_max=tb_max)


def mlp_forward_ref(x, params):
    """Pure-JAX reference for verification (matches the PyTorch eval forward)."""
    B = x.shape[0]
    h = x.reshape(B, -1).astype(jnp.float32) / 255.0
    for i, (W, b) in enumerate(params):
        h = h @ W + b
        if i < len(params) - 1:
            h = jnp.maximum(h, 0.0)
    return h


if __name__ == "__main__":
    key = jax.random.PRNGKey(0)

    # Small shapes consistent with the module: 4-channel 16x16 image.
    B, C, H, W = 2, 4, 16, 16
    in_dim = C * H * W                 # 1024
    shapes = [in_dim, 32, 32, 10]      # two hidden layers + head
    dropout_rate = 0.1                 # inactive at inference

    key, kx, kp = jax.random.split(key, 3)
    x = jax.random.randint(kx, (B, C, H, W), 0, 256, dtype=jnp.int32).astype(jnp.float32)
    params = init_mlp_params(kp, shapes)

    # Pack once (1/255 fold, lane padding, bf16 cast) and reuse for every call.
    packed = pack_params(params, weight_dtype=jnp.bfloat16)

    ref = mlp_forward_ref(x, params)
    out = jax.block_until_ready(mlp_forward_pallas(x, packed))

    assert out.shape == (B, shapes[-1]), f"bad output shape {out.shape}"
    assert jnp.allclose(out.astype(jnp.float32), ref, atol=5e-2, rtol=5e-2), \
        "bf16 kernel mismatch vs reference"

    print("KERNEL_OK")
</pallas_src>

<mosaic_0001>
module attributes {stable_mosaic.version = 11 : i64} {
  func.func @_mlp_kernel(%arg0: i32, %arg1: memref<8x1024xbf16, #tpu.memory_space<vmem>>, %arg2: memref<1024x128xbf16, #tpu.memory_space<vmem>>, %arg3: memref<1x128xf32, #tpu.memory_space<vmem>>, %arg4: memref<128x128xbf16, #tpu.memory_space<vmem>>, %arg5: memref<1x128xf32, #tpu.memory_space<vmem>>, %arg6: memref<128x128xbf16, #tpu.memory_space<vmem>>, %arg7: memref<1x128xf32, #tpu.memory_space<vmem>>, %arg8: memref<8x128xbf16, #tpu.memory_space<vmem>>) attributes {dimension_semantics = [#tpu.dimension_semantics<parallel>], iteration_bounds = array<i64: 1>, scalar_prefetch = 0 : i64, scratch_operands = 0 : i64, tpu.core_type = #tpu.core_type<tc>, window_params = [{transform_indices = @transform_0, window_bounds = array<i64: 8, 1024>}, {pipeline_mode = #tpu.pipeline_mode<synchronous>, transform_indices = @transform_1, window_bounds = array<i64: 1024, 128>}, {pipeline_mode = #tpu.pipeline_mode<synchronous>, transform_indices = @transform_2, window_bounds = array<i64: 1, 128>}, {pipeline_mode = #tpu.pipeline_mode<synchronous>, transform_indices = @transform_3, window_bounds = array<i64: 128, 128>}, {pipeline_mode = #tpu.pipeline_mode<synchronous>, transform_indices = @transform_4, window_bounds = array<i64: 1, 128>}, {pipeline_mode = #tpu.pipeline_mode<synchronous>, transform_indices = @transform_5, window_bounds = array<i64: 128, 128>}, {pipeline_mode = #tpu.pipeline_mode<synchronous>, transform_indices = @transform_6, window_bounds = array<i64: 1, 128>}, {transform_indices = @transform_7, window_bounds = array<i64: 8, 128>}]} {
    %c0 = arith.constant 0 : index
    %c0_0 = arith.constant 0 : index
    %0 = vector.load %arg1[%c0, %c0_0] : memref<8x1024xbf16, #tpu.memory_space<vmem>>, vector<8x1024xbf16>
    %c0_1 = arith.constant 0 : index
    %c0_2 = arith.constant 0 : index
    %1 = vector.load %arg2[%c0_1, %c0_2] : memref<1024x128xbf16, #tpu.memory_space<vmem>>, vector<1024x128xbf16>
    %c0_3 = arith.constant 0 : index
    %c0_4 = arith.constant 0 : index
    %2 = vector.load %arg3[%c0_3, %c0_4] : memref<1x128xf32, #tpu.memory_space<vmem>>, vector<1x128xf32>
    %cst = arith.constant dense<0.000000e+00> : vector<8x128xf32>
    %3 = tpu.matmul %0, %1, %cst {dimension_numbers = #tpu.dot_dimension_numbers<[1], [0], [0], [1], [0, 0, 1, 1], [], []>} : vector<8x1024xbf16>, vector<1024x128xbf16>, vector<8x128xf32> -> vector<8x128xf32>
    %4 = vector.broadcast %2 : vector<1x128xf32> to vector<8x128xf32>
    %5 = arith.addf %3, %4 : vector<8x128xf32>
    %cst_5 = arith.constant 0.000000e+00 : f32
    %6 = vector.broadcast %cst_5 : f32 to vector<8x128xf32>
    %7 = arith.maximumf %5, %6 : vector<8x128xf32>
    %c0_6 = arith.constant 0 : index
    %c0_7 = arith.constant 0 : index
    %8 = vector.load %arg4[%c0_6, %c0_7] : memref<128x128xbf16, #tpu.memory_space<vmem>>, vector<128x128xbf16>
    %c0_8 = arith.constant 0 : index
    %c0_9 = arith.constant 0 : index
    %9 = vector.load %arg5[%c0_8, %c0_9] : memref<1x128xf32, #tpu.memory_space<vmem>>, vector<1x128xf32>
    %10 = arith.truncf %7 : vector<8x128xf32> to vector<8x128xbf16>
    %cst_10 = arith.constant dense<0.000000e+00> : vector<8x128xf32>
    %11 = tpu.matmul %10, %8, %cst_10 {dimension_numbers = #tpu.dot_dimension_numbers<[1], [0], [0], [1], [0, 0, 1, 1], [], []>} : vector<8x128xbf16>, vector<128x128xbf16>, vector<8x128xf32> -> vector<8x128xf32>
    %12 = vector.broadcast %9 : vector<1x128xf32> to vector<8x128xf32>
    %13 = arith.addf %11, %12 : vector<8x128xf32>
    %cst_11 = arith.constant 0.000000e+00 : f32
    %14 = vector.broadcast %cst_11 : f32 to vector<8x128xf32>
    %15 = arith.maximumf %13, %14 : vector<8x128xf32>
    %c0_12 = arith.constant 0 : index
    %c0_13 = arith.constant 0 : index
    %16 = vector.load %arg6[%c0_12, %c0_13] : memref<128x128xbf16, #tpu.memory_space<vmem>>, vector<128x128xbf16>
    %c0_14 = arith.constant 0 : index
    %c0_15 = arith.constant 0 : index
    %17 = vector.load %arg7[%c0_14, %c0_15] : memref<1x128xf32, #tpu.memory_space<vmem>>, vector<1x128xf32>
    %18 = arith.truncf %15 : vector<8x128xf32> to vector<8x128xbf16>
    %cst_16 = arith.constant dense<0.000000e+00> : vector<8x128xf32>
    %19 = tpu.matmul %18, %16, %cst_16 {dimension_numbers = #tpu.dot_dimension_numbers<[1], [0], [0], [1], [0, 0, 1, 1], [], []>} : vector<8x128xbf16>, vector<128x128xbf16>, vector<8x128xf32> -> vector<8x128xf32>
    %20 = vector.broadcast %17 : vector<1x128xf32> to vector<8x128xf32>
    %21 = arith.addf %19, %20 : vector<8x128xf32>
    %22 = arith.truncf %21 : vector<8x128xf32> to vector<8x128xbf16>
    %c0_17 = arith.constant 0 : index
    %c0_18 = arith.constant 0 : index
    %23 = vector.load %arg8[%c0_17, %c0_18] : memref<8x128xbf16, #tpu.memory_space<vmem>>, vector<8x128xbf16>
    tpu.vector_store %arg8[%c0_17, %c0_18], %22 {strides = array<i32>} : memref<8x128xbf16, #tpu.memory_space<vmem>>, vector<8x128xbf16>,
    return
  }
  func.func @transform_0(%arg0: i32) -> (i32, i32) {
    %c0_i32 = arith.constant 0 : i32
    %c0_i32_0 = arith.constant 0 : i32
    return %arg0, %c0_i32 : i32, i32
  }
  func.func @transform_1(%arg0: i32) -> (i32, i32) {
    %c0_i32 = arith.constant 0 : i32
    %c0_i32_0 = arith.constant 0 : i32
    %c0_i32_1 = arith.constant 0 : i32
    return %c0_i32, %c0_i32_0 : i32, i32
  }
  func.func @transform_2(%arg0: i32) -> (i32, i32) {
    %c0_i32 = arith.constant 0 : i32
    %c0_i32_0 = arith.constant 0 : i32
    %c0_i32_1 = arith.constant 0 : i32
    return %c0_i32, %c0_i32_0 : i32, i32
  }
  func.func @transform_3(%arg0: i32) -> (i32, i32) {
    %c0_i32 = arith.constant 0 : i32
    %c0_i32_0 = arith.constant 0 : i32
    %c0_i32_1 = arith.constant 0 : i32
    return %c0_i32, %c0_i32_0 : i32, i32
  }
  func.func @transform_4(%arg0: i32) -> (i32, i32) {
    %c0_i32 = arith.constant 0 : i32
    %c0_i32_0 = arith.constant 0 : i32
    %c0_i32_1 = arith.constant 0 : i32
    return %c0_i32, %c0_i32_0 : i32, i32
  }
  func.func @transform_5(%arg0: i32) -> (i32, i32) {
    %c0_i32 = arith.constant 0 : i32
    %c0_i32_0 = arith.constant 0 : i32
    %c0_i32_1 = arith.constant 0 : i32
    return %c0_i32, %c0_i32_0 : i32, i32
  }
  func.func @transform_6(%arg0: i32) -> (i32, i32) {
    %c0_i32 = arith.constant 0 : i32
    %c0_i32_0 = arith.constant 0 : i32
    %c0_i32_1 = arith.constant 0 : i32
    return %c0_i32, %c0_i32_0 : i32, i32
  }
  func.func @transform_7(%arg0: i32) -> (i32, i32) {
    %c0_i32 = arith.constant 0 : i32
    %c0_i32_0 = arith.constant 0 : i32
    return %arg0, %c0_i32 : i32, i32
  }
}

</mosaic_0001>

<bundles_post_ra>
// kernel: _forward_packed.1
= control target key start
LH: loop header
LB: loop body
LE: loop exit
PB: predicated region body
PF: predicated region fallthrough
CT: control target
= control target key end

     0   :  { %12 = vsyncpa [#allocation3], 0  ;;  %s1615_s0 = inlined_call_operand.vmem [shape: bf16[2,1024], index: 0, kind: input, shape index: {}]   ;;  %s1616_s1 = inlined_call_operand.hbm [shape: bf16[1024,128], index: 1, kind: input, shape index: {}]   ;;  %s1617_s2 = inlined_call_operand.vmem [shape: f32[1,128], index: 2, kind: input, shape index: {}]   ;;  %s1618_s3 = inlined_call_operand.vmem [shape: bf16[128,128], index: 3, kind: input, shape index: {}]   ;;  %s1619_s4 = inlined_call_operand.vmem [shape: f32[1,128], index: 4, kind: input, shape index: {}]   ;;  %s1620_s5 = inlined_call_operand.vmem [shape: bf16[128,128], index: 5, kind: input, shape index: {}]   ;;  %s1621_s6 = inlined_call_operand.vmem [shape: f32[1,128], index: 6, kind: input, shape index: {}]   ;;  %s1622_s7 = inlined_call_operand.hbm [shape: bf16[2,128], index: 7, kind: output, shape index: {}]  }
   0x1   :  { %13 = vsyncpa [#allocation4], 0  ;;  %s1452_s24 = smov [#allocation2]  }
   0x2   :  { %s21_s25 = sshll.u32 %s1452_s24, 4  ;;  %s22_s25 = int_to_ptr.vmem [resolvable:$true] %s21_s25 }
   0x3   :  { %s1416_s26 = scalar_lea.vmem %s22_s25, 8192  ;;  %p1421_p1 = scmp.lt.s32.totalorder %s22_s25, %s22_s25 }
   0x4   :  { %p1417_p0 = scmp.ne.s32.totalorder %s22_s25, %s1416_s26  ;;  %p1422_p2 = scmp.lt.s32.totalorder %s1416_s26, %s1416_s26 }
   0x6   :  { %p1423_p3 = por %p1422_p2, %p1421_p1 }
   0x8   :  { %p1424_p4 = pnand %p1423_p3, %p1417_p0 }
   0xa   :  { %1427 = shalt.err (!%p1424_p4)
}
   0xb   :  { %s1453_s27 = smov 64   ;;  %s1454_s28 = smov 4  }
   0xc   :  { %27 = dma.hbm_to_vmem [thread:$0]  %s1616_s1, 8192, %s22_s25, [#allocation3], %s1453_s27, %s1453_s27, %s1454_s28  }
   0xd   :  { %1448 = dma.done.wait [#allocation3], 8192  }
   0xe   :  { %1449 = vsyncadd [#allocation3], 4294959104  ;;  %v1322_v0 = vld [vmem:[#allocation2 + $0x78] sm:$0xff]   ;;  %v1326_v4 = vld [vmem:[#allocation2 + $0x70] sm:$0xff]   ;;  %v1455_v24 = vmov 1966171168   ;;  %v192_v26 = vlaneseq }
   0xf   :  { %v1323_v1 = vld [vmem:[#allocation2 + $0xf8] sm:$0xff]   ;;  %1167 = vmatprep.subr.bf16.mxu0 %v1322_v0  ;;  %v1327_v5 = vld [vmem:[#allocation2 + $0xf0] sm:$0xff]   ;;  %v1330_v8 = vld [vmem:[#allocation2 + $0x68] sm:$0xff]   ;;  %v190_v25 = vunpack.c.l.s4 %v1455_v24  ;;  %vm1457_vm0 = vmmov 0  }
  0x10   :  { %v1324_v2 = vld [vmem:[#allocation2 + $0x38] sm:$0xff]   ;;  %1189 = vmatprep.subr.bf16.mxu1 %v1323_v1  ;;  %v1328_v6 = vld [vmem:[#allocation2 + $0x30] sm:$0xff]   ;;  %v1331_v9 = vld [vmem:[#allocation2 + $0xe8] sm:$0xff]   ;;  %v193_v32 = vshrl.u32 %v192_v26, 7 }
  0x11   :  { %v1325_v3 = vld [vmem:[#allocation2 + $0xb8] sm:$0xff]   ;;  %1168 = vmatpush3.bf16.msra.mxu0 %v1324_v2  ;;  %v1329_v7 = vld [vmem:[#allocation2 + $0xb0] sm:$0xff]   ;;  %v1332_v10 = vld [vmem:[#allocation2 + $0x28] sm:$0xff]   ;;  %v191_v31 = vunpack.c.0.s8 %v190_v25 }
  0x12   :  { %1190 = vmatpush3.bf16.msra.mxu1 %v1325_v3  ;;  %1169 = vmatprep.subr.bf16.mxu0 %v1326_v4  ;;  %v1333_v11 = vld [vmem:[#allocation2 + $0xa8] sm:$0xff]   ;;  %v1334_v12 = vld [vmem:[#allocation2 + $0x60] sm:$0xff]   ;;  %v1338_v16 = vld [vmem:[#allocation2 + $0x58] sm:$0xff]  }
  0x13   :  { %1191 = vmatprep.subr.bf16.mxu1 %v1327_v5  ;;  %v1335_v13 = vld [vmem:[#allocation2 + $0xe0] sm:$0xff]   ;;  %v1339_v17 = vld [vmem:[#allocation2 + $0xd8] sm:$0xff]   ;;  %v1342_v20 = vld [vmem:[#allocation2 + $0x50] sm:$0xff]   ;;  %v1504_v37 = vsub.s32 %v191_v31, %v193_v32 }
  0x14   :  { %v1336_v14 = vld [vmem:[#allocation2 + $0x20] sm:$0xff]   ;;  %v1340_v18 = vld [vmem:[#allocation2 + $0x18] sm:$0xff]   ;;  %v1343_v21 = vld [vmem:[#allocation2 + $0xd0] sm:$0xff]  }
  0x15   :  { %1170 = vmatpush3.bf16.msra.mxu0 %v1328_v6  ;;  %v1337_v15 = vld [vmem:[#allocation2 + $0xa0] sm:$0xff]   ;;  %v1341_v19 = vld [vmem:[#allocation2 + $0x98] sm:$0xff]   ;;  %v1344_v22 = vld [vmem:[#allocation2 + $0x10] sm:$0xff]  }
  0x16   :  { %1192 = vmatpush3.bf16.msra.mxu1 %v1329_v7  ;;  %1171 = vmatprep.subr.bf16.mxu0 %v1330_v8  ;;  %v1345_v23 = vld [vmem:[#allocation2 + $0x90] sm:$0xff]   ;;  %v1346_v27 = vld [vmem:[#allocation2 + $0x48] sm:$0xff]   ;;  %v1350_v33 = vld [vmem:[#allocation2 + $0x40] sm:$0xff]  }
  0x17   :  { %1193 = vmatprep.subr.bf16.mxu1 %v1331_v9  ;;  %v1347_v28 = vld [vmem:[#allocation2 + $0xc8] sm:$0xff]   ;;  %v1351_v34 = vld [vmem:[#allocation2 + $0xc0] sm:$0xff]   ;;  %v1357_v40 = vld [vmem:[%s1615_s0 + $0x10] ss:$8 sps:$4 sm:$0xff]  }
  0x18   :  { %v1348_v29 = vld [vmem:[#allocation2 + $0x8] sm:$0xff]   ;;  %v1352_v35 = vld [vmem:[#allocation2] sm:$0xff]   ;;  %v1359_v41 = vld [vmem:[%s1615_s0 + $0x14] ss:$8 sps:$4 sm:$0xff]   ;;  %v209_v45 = vrot.slane %v1357_v40, %v1504_v37 }
  0x19   :  { %1172 = vmatpush3.bf16.msra.mxu0 %v1332_v10  ;;  %v1349_v30 = vld [vmem:[#allocation2 + $0x88] sm:$0xff]   ;;  %v1353_v36 = vld [vmem:[#allocation2 + $0x80] sm:$0xff]   ;;  %v1360_v43 = vld [vmem:[#allocation2 + $0x178] sm:$0xff]   ;;  %v1524_v47 = vrot.slane %v1359_v41, %v1504_v37 }
  0x1a   :  { %1194 = vmatpush3.bf16.msra.mxu1 %v1333_v11  ;;  %1173 = vmatprep.subr.bf16.mxu0 %v1334_v12  ;;  %v1354_v38 = vld [vmem:[%s1615_s0] ss:$8 sps:$4 sm:$0xff]   ;;  %v1356_v39 = vld [vmem:[%s1615_s0 + $0x4] ss:$8 sps:$4 sm:$0xff]   ;;  %v1361_v46 = vld [vmem:[#allocation2 + $0x1f8] sm:$0xff]  }
  0x1b   :  { %1195 = vmatprep.subr.bf16.mxu1 %v1335_v13  ;;  %v195_v42 = vrot.slane %v1354_v38, %v1504_v37  ;;  %v1520_v44 = vrot.slane %v1356_v39, %v1504_v37  ;;  %v1362_v51 = vld [vmem:[#allocation2 + $0x138] sm:$0xff]   ;;  %v1364_v56 = vld [vmem:[#allocation2 + $0x170] sm:$0xff]   ;;  %v1368_v63 = vld [vmem:[#allocation2 + $0x168] sm:$0xff]  }
  0x1c   :  { %v1363_v54 = vld [vmem:[#allocation2 + $0x1b8] sm:$0xff]   ;;  %v1365_v59 = vld [vmem:[#allocation2 + $0x1f0] sm:$0xff]   ;;  %v1369_v0 = vld [vmem:[#allocation2 + $0x1e8] sm:$0xff]  }
  0x1d   :  { %1174 = vmatpush3.bf16.msra.mxu0 %v1336_v14  ;;  %v218_v48 = vcombine.high %v195_v42, %v209_v45  ;;  %v217_v49 = vcombine.low %v195_v42, %v209_v45  ;;  %v220_v50 = vcombine.high %v1520_v44, %v1524_v47  ;;  %v1366_v60 = vld [vmem:[#allocation2 + $0x130] sm:$0xff]   ;;  %v1370_v1 = vld [vmem:[#allocation2 + $0x128] sm:$0xff]   ;;  %v1372_v3 = vld [vmem:[#allocation2 + $0x160] sm:$0xff]  }
  0x1e   :  { %1196 = vmatpush3.bf16.msra.mxu1 %v1337_v15  ;;  %1175 = vmatprep.subr.bf16.mxu0 %v1338_v16  ;;  %v1367_v62 = vld [vmem:[#allocation2 + $0x1b0] sm:$0xff]   ;;  %v1371_v2 = vld [vmem:[#allocation2 + $0x1a8] sm:$0xff]   ;;  %v1373_v4 = vld [vmem:[#allocation2 + $0x1e0] sm:$0xff]  }
  0x1f   :  { %1197 = vmatprep.subr.bf16.mxu1 %v1339_v17  ;;  %v241_v52 = vrot.slane %v218_v48, %v1504_v37  ;;  %v227_v53 = vrot.slane %v217_v49, %v1504_v37  ;;  %v248_v55 = vrot.slane %v220_v50, %v1504_v37  ;;  %v1374_v5 = vld [vmem:[#allocation2 + $0x120] sm:$0xff]   ;;  %v1376_v7 = vld [vmem:[#allocation2 + $0x158] sm:$0xff]   ;;  %v1380_v11 = vld [vmem:[#allocation2 + $0x150] sm:$0xff]  }
  0x20   :  { %v1375_v6 = vld [vmem:[#allocation2 + $0x1a0] sm:$0xff]   ;;  %v1377_v8 = vld [vmem:[#allocation2 + $0x1d8] sm:$0xff]   ;;  %v1381_v12 = vld [vmem:[#allocation2 + $0x1d0] sm:$0xff]  }
  0x21   :  { %1176 = vmatpush3.bf16.msra.mxu0 %v1340_v18  ;;  %677 = vmatprep.mubr.bf16.mxu0 %v241_v52  ;;  %v251_v57 = vcombine.high %v241_v52, %v241_v52  ;;  %v249_v58 = vcombine.high %v227_v53, %v227_v53  ;;  %v252_v61 = vcombine.high %v248_v55, %v248_v55  ;;  %v1378_v9 = vld [vmem:[#allocation2 + $0x118] sm:$0xff]   ;;  %v1382_v13 = vld [vmem:[#allocation2 + $0x110] sm:$0xff]   ;;  %v1384_v15 = vld [vmem:[#allocation2 + $0x148] sm:$0xff]  }
  0x22   :  { %1198 = vmatpush3.bf16.msra.mxu1 %v1341_v19  ;;  %1177 = vmatprep.subr.bf16.mxu0 %v1342_v20  ;;  %v1379_v10 = vld [vmem:[#allocation2 + $0x198] sm:$0xff]   ;;  %v1383_v14 = vld [vmem:[#allocation2 + $0x190] sm:$0xff]   ;;  %v1385_v16 = vld [vmem:[#allocation2 + $0x1c8] sm:$0xff]  }
  0x23   :  { %1199 = vmatprep.subr.bf16.mxu1 %v1343_v21  ;;  %717 = vmatprep.mubr.bf16.mxu1 %v251_v57  ;;  %v1386_v17 = vld [vmem:[#allocation2 + $0x108] sm:$0xff]   ;;  %v1388_v19 = vld [vmem:[#allocation2 + $0x140] sm:$0xff]   ;;  %v219_v21 = vcombine.low %v1520_v44, %v1524_v47  ;;  %v1392_v26 = vld [vmem:[%s1618_s3 + $0x38] sm:$0xff]  }
  0x24   :  { %v1387_v18 = vld [vmem:[#allocation2 + $0x188] sm:$0xff]   ;;  %v1389_v20 = vld [vmem:[#allocation2 + $0x1c0] sm:$0xff]   ;;  %v1396_v31 = vld [vmem:[%s1618_s3 + $0x18] sm:$0xff]  }
  0x25   :  { %1178 = vmatpush3.bf16.msra.mxu0 %v1344_v22  ;;  %v1390_v22 = vld [vmem:[#allocation2 + $0x100] sm:$0xff]   ;;  %v234_v24 = vrot.slane %v219_v21, %v1504_v37  ;;  %v1397_v32 = vld [vmem:[%s1618_s3 + $0x10] sm:$0xff]   ;;  %v1402_v38 = vld [vmem:[%s1620_s5 + $0x28] sm:$0xff]  }
  0x26   :  { %1200 = vmatpush3.bf16.msra.mxu1 %v1345_v23  ;;  %1179 = vmatprep.subr.bf16.mxu0 %v1346_v27  ;;  %v1391_v23 = vld [vmem:[#allocation2 + $0x180] sm:$0xff]   ;;  %v1456_v27 = vmov 0.0   ;;  %v1404_v40 = vld [vmem:[%s1620_s5 + $0x18] sm:$0xff]   ;;  %v1405_v41 = vld [vmem:[%s1620_s5 + $0x10] sm:$0xff]  }
  0x27   :  { %1201 = vmatprep.subr.bf16.mxu1 %v1347_v28  ;;  %v250_v25 = vcombine.high %v234_v24, %v234_v24  ;;  %v1393_v28 = vld [vmem:[%s1618_s3 + $0x30] sm:$0xff]   ;;  %v1403_v39 = vld [vmem:[%s1620_s5 + $0x20] sm:$0xff]  }
  0x29   :  { %1180 = vmatpush3.bf16.msra.mxu0 %v1348_v29  ;;  %v1394_v29 = vld [vmem:[%s1618_s3 + $0x28] sm:$0xff]  }
  0x2a   :  { %1202 = vmatpush3.bf16.msra.mxu1 %v1349_v30  ;;  %1181 = vmatprep.subr.bf16.mxu0 %v1350_v33  ;;  %v1395_v30 = vld [vmem:[%s1618_s3 + $0x20] sm:$0xff]   ;;  %v1398_v33 = vld [vmem:[%s1618_s3 + $0x8] sm:$0xff]  }
  0x2b   :  { %1203 = vmatprep.subr.bf16.mxu1 %v1351_v34  ;;  %v1399_v34 = vld [vmem:[%s1618_s3] sm:$0xff]  }
  0x2d   :  { %1182 = vmatpush3.bf16.msra.mxu0 %v1352_v35  ;;  %v1400_v35 = vld [vmem:[%s1620_s5 + $0x38] sm:$0xff]  }
  0x2e   :  { %1204 = vmatpush3.bf16.msra.mxu1 %v1353_v36  ;;  %1211 = vmatprep.subr.bf16.mxu0 %v1360_v43  ;;  %v1401_v36 = vld [vmem:[%s1620_s5 + $0x30] sm:$0xff]  }
  0x2f   :  { %1233 = vmatprep.subr.bf16.mxu1 %v1361_v46 }
  0x30   :  { %678 = vmatmul.mubr.bf16.vlgmr.msra.gmra.mxu0 %v227_v53 }
  0x31   :  { %1212 = vmatpush3.bf16.msra.mxu0 %v1362_v51  ;;  %718 = vmatmul.mubr.bf16.vlgmr.msra.gmra.mxu1 %v249_v58  ;;  %v1082_v51 = vld [vmem:[%s1617_s2] ss:$0 sm:$0xff] }
  0x32   :  { %1213 = vmatprep.subr.bf16.mxu0 %v1364_v56  ;;  %1234 = vmatpush3.bf16.msra.mxu1 %v1363_v54 }
  0x33   :  { %757 = vmatprep.mubr.bf16.mxu0 %v248_v55  ;;  %1235 = vmatprep.subr.bf16.mxu1 %v1365_v59 }
  0x34   :  { %797 = vmatprep.mubr.bf16.mxu1 %v252_v61 }
  0x35   :  { %1214 = vmatpush3.bf16.msra.mxu0 %v1366_v60 }
  0x36   :  { %1215 = vmatprep.subr.bf16.mxu0 %v1368_v63  ;;  %1236 = vmatpush3.bf16.msra.mxu1 %v1367_v62 }
  0x37   :  { %1237 = vmatprep.subr.bf16.mxu1 %v1369_v0 }
  0x39   :  { %1216 = vmatpush3.bf16.msra.mxu0 %v1370_v1 }
  0x3a   :  { %1217 = vmatprep.subr.bf16.mxu0 %v1372_v3  ;;  %1238 = vmatpush3.bf16.msra.mxu1 %v1371_v2 }
  0x3b   :  { %1239 = vmatprep.subr.bf16.mxu1 %v1373_v4 }
  0x3d   :  { %1218 = vmatpush3.bf16.msra.mxu0 %v1374_v5  ;;  %v1406_v5 = vld [vmem:[%s1620_s5 + $0x8] sm:$0xff]  }
  0x3e   :  { %1219 = vmatprep.subr.bf16.mxu0 %v1376_v7  ;;  %1240 = vmatpush3.bf16.msra.mxu1 %v1375_v6  ;;  %v1407_v6 = vld [vmem:[%s1620_s5] sm:$0xff]  }
  0x3f   :  { %1241 = vmatprep.subr.bf16.mxu1 %v1377_v8  ;;  %v1147_v7 = vld [vmem:[%s1619_s4] ss:$0 sm:$0xff] }
  0x41   :  { %1220 = vmatpush3.bf16.msra.mxu0 %v1378_v9 }
  0x42   :  { %1221 = vmatprep.subr.bf16.mxu0 %v1380_v11  ;;  %1242 = vmatpush3.bf16.msra.mxu1 %v1379_v10 }
  0x43   :  { %1243 = vmatprep.subr.bf16.mxu1 %v1381_v12 }
  0x45   :  { %1222 = vmatpush3.bf16.msra.mxu0 %v1382_v13 }
  0x46   :  { %1223 = vmatprep.subr.bf16.mxu0 %v1384_v15  ;;  %1244 = vmatpush3.bf16.msra.mxu1 %v1383_v14  ;;  %v1156_v15 = vld [vmem:[%s1621_s6] ss:$0 sm:$0xff] }
  0x47   :  { %1245 = vmatprep.subr.bf16.mxu1 %v1385_v16 }
  0x49   :  { %1224 = vmatpush3.bf16.msra.mxu0 %v1386_v17 }
  0x4a   :  { %1225 = vmatprep.subr.bf16.mxu0 %v1388_v19  ;;  %1246 = vmatpush3.bf16.msra.mxu1 %v1387_v18 }
  0x4b   :  { %1247 = vmatprep.subr.bf16.mxu1 %v1389_v20 }
  0x4d   :  { %1226 = vmatpush3.bf16.msra.mxu0 %v1390_v22 }
  0x4e   :  { %1248 = vmatpush3.bf16.msra.mxu1 %v1391_v23  ;;  %1273 = vmatprep.subr.bf16.mxu0 %v1456_v27 }
  0x4f   :  { %1293 = vmatprep.subr.bf16.mxu1 %v1456_v27 }
  0x50   :  { %758 = vmatmul.mubr.bf16.vlgmr.msra.gmra.mxu0 %v234_v24 }
  0x51   :  { %798 = vmatmul.mubr.bf16.vlgmr.msra.gmra.mxu1 %v250_v25  ;;  %1274 = vmatpush3.bf16.msra.mxu0 %v1392_v26 }
  0x52   :  { %1275 = vmatprep.subr.bf16.mxu0 %v1456_v27  ;;  %1289 = vmatprep.mubr.msk.bf16.mxu0 %vm1457_vm0, %v1456_v27 }
  0x53   :  { %1309 = vmatprep.mubr.msk.bf16.mxu1 %vm1457_vm0, %v1456_v27  ;;  %1294 = vmatpush3.bf16.msra.mxu1 %v1400_v35 }
  0x54   :  { %1295 = vmatprep.subr.bf16.mxu1 %v1456_v27 }
  0x55   :  { %1276 = vmatpush3.bf16.msra.mxu0 %v1393_v28 }
  0x56   :  { %1277 = vmatprep.subr.bf16.mxu0 %v1456_v27 }
  0x57   :  { %1296 = vmatpush3.bf16.msra.mxu1 %v1401_v36 }
  0x58   :  { %1297 = vmatprep.subr.bf16.mxu1 %v1456_v27 }
  0x59   :  { %1278 = vmatpush3.bf16.msra.mxu0 %v1394_v29 }
  0x5a   :  { %1279 = vmatprep.subr.bf16.mxu0 %v1456_v27 }
  0x5b   :  { %1298 = vmatpush3.bf16.msra.mxu1 %v1402_v38 }
  0x5c   :  { %1299 = vmatprep.subr.bf16.mxu1 %v1456_v27 }
  0x5d   :  { %1280 = vmatpush3.bf16.msra.mxu0 %v1395_v30 }
  0x5e   :  { %1281 = vmatprep.subr.bf16.mxu0 %v1456_v27 }
  0x5f   :  { %1300 = vmatpush3.bf16.msra.mxu1 %v1403_v39 }
  0x60   :  { %1301 = vmatprep.subr.bf16.mxu1 %v1456_v27 }
  0x61   :  { %1282 = vmatpush3.bf16.msra.mxu0 %v1396_v31 }
  0x62   :  { %1283 = vmatprep.subr.bf16.mxu0 %v1456_v27 }
  0x63   :  { %1302 = vmatpush3.bf16.msra.mxu1 %v1404_v40 }
  0x64   :  { %1303 = vmatprep.subr.bf16.mxu1 %v1456_v27 }
  0x65   :  { %1284 = vmatpush3.bf16.msra.mxu0 %v1397_v32 }
  0x66   :  { %1285 = vmatprep.subr.bf16.mxu0 %v1456_v27 }
  0x67   :  { %1304 = vmatpush3.bf16.msra.mxu1 %v1405_v41 }
  0x68   :  { %1305 = vmatprep.subr.bf16.mxu1 %v1456_v27 }
  0x69   :  { %1286 = vmatpush3.bf16.msra.mxu0 %v1398_v33 }
  0x6a   :  { %1287 = vmatprep.subr.bf16.mxu0 %v1456_v27 }
  0x6b   :  { %1306 = vmatpush3.bf16.msra.mxu1 %v1406_v5 }
  0x6c   :  { %1307 = vmatprep.subr.bf16.mxu1 %v1456_v27 }
  0x6d   :  { %1288 = vmatpush3.bf16.msra.mxu0 %v1399_v34 }
  0x6f   :  { %1308 = vmatpush3.bf16.msra.mxu1 %v1407_v6 }
  0xf0   :  { %v1183_v42 = vpop.f32.mrf.mxu0 }
  0xf1   :  { %v1205_v43 = vpop.f32.mrf.mxu1 }
  0xf2   :  { %v1184_v44 = vpop.f32.mrf.mxu0 }
  0xf3   :  { %v1206_v45 = vpop.f32.mrf.mxu1  ;;  %v1185_v50 = vadd.f32 %v1184_v44, %v1183_v42 }
  0xf4   :  { %v1186_v46 = vpop.f32.mrf.mxu0  ;;  %v1207_v53 = vadd.f32 %v1206_v45, %v1205_v43 }
  0xf5   :  { %v1208_v47 = vpop.f32.mrf.mxu1  ;;  %v680_v52 = vadd.f32 %v1185_v50, %v1082_v51 }
  0xf6   :  { %v1187_v48 = vpop.f32.mrf.mxu0 }
  0xf7   :  { %v1209_v49 = vpop.f32.mrf.mxu1  ;;  %v720_v57 = vadd.f32 %v1207_v53, %v680_v52 }
 0x110   :  { %v1227_v54 = vpop.f32.mrf.mxu0 }
 0x111   :  { %v1249_v55 = vpop.f32.mrf.mxu1 }
 0x112   :  { %v1228_v56 = vpop.f32.mrf.mxu0 }
 0x113   :  { %v1229_v58 = vadd.f32 %v1228_v56, %v1227_v54  ;;  %v1250_v59 = vpop.f32.mrf.mxu1 }
 0x114   :  { %v1230_v60 = vpop.f32.mrf.mxu0  ;;  %v1251_v62 = vadd.f32 %v1250_v59, %v1249_v55 }
 0x115   :  { %v760_v61 = vadd.f32 %v1229_v58, %v720_v57  ;;  %v1252_v63 = vpop.f32.mrf.mxu1 }
 0x116   :  { %v1231_v0 = vpop.f32.mrf.mxu0 }
 0x117   :  { %v800_v1 = vadd.f32 %v1251_v62, %v760_v61  ;;  %v1253_v2 = vpop.f32.mrf.mxu1 }
 0x119   :  { %v805_v3 = vmax.f32 %v800_v1, 0.0 }
 0x11b   :  { %v823_v4 = vpack.c.bf16 %v805_v3, %v805_v3 }
 0x11d   :  { %1290 = vmatmul.mubr.bf16.vlgmr.msra.gmra.mxu0 %v823_v4 }
 0x1dd   :  { %v912_v8 = vpop.f32.mrf.mxu0 }
 0x1de   :  { %v913_v9 = vadd.f32 %v1147_v7, %v912_v8 }
 0x1df   :  { %v1291_v10 = vpop.f32.mrf.mxu0 }
 0x1e0   :  { %v918_v11 = vmax.f32 %v913_v9, 0.0 }
 0x1e1   :  { %v915_v12 = vpop.f32.mrf.mxu0 }
 0x1e2   :  { %v936_v13 = vpack.c.bf16 %v918_v11, %v918_v11 }
 0x1e3   :  { %v1292_v14 = vpop.f32.mrf.mxu0 }
 0x1e4   :  { %1310 = vmatmul.mubr.bf16.vlgmr.msra.gmra.mxu1 %v936_v13 }
 0x2a4   :  { %v1025_v16 = vpop.f32.mrf.mxu1 }
 0x2a5   :  { %v1026_v17 = vadd.f32 %v1156_v15, %v1025_v16 }
 0x2a6   :  { %v1311_v18 = vpop.f32.mrf.mxu1 }
 0x2a7   :  { %v1031_v19 = vpack.c.bf16 %v1026_v17, %v1026_v17 }
 0x2a8   :  { %v1028_v20 = vpop.f32.mrf.mxu1 }
 0x2a9   :  { %v1039_v21 = vrot.slane %v1031_v19, %v1504_v37 }
 0x2aa   :  { %v1312_v22 = vpop.f32.mrf.mxu1 }
 0x2ab   :  { %v1040_v23 = vcombine.high %v1039_v21, %v1039_v21  ;;  %v1047_v24 = vrot.slane %v1039_v21, %v1504_v37  ;;  %1165 = vst.sshfl [vmem:[#allocation5] sm:$0x1 pattern:$0x73625140] %v1039_v21 }
 0x2ad   :  { %v1054_v25 = vrot.slane %v1040_v23, %v1504_v37  ;;  %v1055_v26 = vcombine.high %v1047_v24, %v1047_v24  ;;  %1166 = vst.sshfl [vmem:[#allocation5 + $0x1] sm:$0x1 pattern:$0x73625140] %v1040_v23 }
 0x2af   :  { %v1056_v27 = vcombine.high %v1054_v25, %v1054_v25  ;;  %1063 = vst [vmem:[#allocation5 + $0x2] sm:$0x1] %v1055_v26 }
 0x2b1   :  { %1064 = vst [vmem:[#allocation5 + $0x3] sm:$0x1] %v1056_v27 }
 0x2b2   :  { %1069 = vsyncadd [#allocation4], 48  ;;  %s1458_s4 = smov [#allocation5]  }
 0x2b3   :  { %s1070_s5 = sshll.u32 %s1458_s4, 4  ;;  %s1071_s5 = int_to_ptr.vmem [resolvable:$true] %s1070_s5 }
 0x2b4   :  { %s1428_s6 = scalar_lea.vmem %s1071_s5, 16  ;;  %s1432_s25 = scalar_lea.vmem %s1071_s5, 64 }
 0x2b5   :  { %p1429_p5 = scmp.ne.s32.totalorder %s1071_s5, %s1428_s6  ;;  %p1433_p6 = scmp.lt.s32.totalorder %s1071_s5, %s1071_s5 }
 0x2b6   :  { %p1434_p7 = scmp.lt.s32.totalorder %s1432_s25, %s1428_s6 }
 0x2b8   :  { %p1435_p8 = por %p1434_p7, %p1433_p6 }
 0x2ba   :  { %p1436_p9 = pnand %p1435_p8, %p1429_p5 }
 0x2bc   :  { %1439 = shalt.err (!%p1436_p9)
}
 0x2bd   :  { %s1459_s26 = smov 16   ;;  %s1460_s27 = smov 1  }
 0x2be   :  { %1076 = dma.vmem_to_hbm [thread:$0]  %s1071_s5, 16, %s1622_s7, [#allocation4], %s1459_s26, %s1459_s26, %s1460_s27  }
 0x2bf   :  { %1450 = dma.done.wait [#allocation4], 64  }
 0x2c0   :  { %1451 = vsyncadd [#allocation4], 4294967232 }
 0x2c1   :  { %1080 = vsyncpa [#allocation3], 1 }
 0x2c2   :  { %1081 = vsyncpa [#allocation4], 1 }

</bundles_post_ra>
